<compile_context>
chip_gen: v7x
topology: tpu7x:2x2x1
jax: 0.10.0
libtpu: 0.0.40
codegen_flags: <defaults>
</compile_context>

<pallas_src>
import functools

import jax
import jax.numpy as jnp
from jax.experimental import pallas as pl
from jax.experimental.pallas import tpu as pltpu


def _rhythmnet_loss_kernel(r_ref, t_ref, g_ref, loss_ref, *, inv_nr, inv_ng, lambd):
    # L1 loss (mean): sublane-axis partial sums on the VPU, one cross-lane
    # reduce on the XLU to finish.
    diff = jnp.abs(r_ref[...] - t_ref[...])
    l1 = jnp.sum(jnp.sum(diff, axis=0, keepdims=True)) * inv_nr

    # Smooth loss: mean absolute deviation from the mean of the gru outputs.
    g = g_ref[...]
    g_mean = jnp.sum(jnp.sum(g, axis=0, keepdims=True)) * inv_ng
    dev = jnp.abs(g - g_mean)
    smooth = jnp.sum(jnp.sum(dev, axis=0, keepdims=True)) * inv_ng

    loss_ref[0, 0] = l1 + lambd * smooth


def _as_2d_f32(x):
    """Present the tensor as a 2-D f32 array without padding or copies beyond a cast."""
    x = jnp.asarray(x, jnp.float32)
    if x.ndim == 0:
        return x.reshape(1, 1)
    if x.ndim == 1:
        return x.reshape(1, -1)
    return x.reshape(-1, x.shape[-1])


def rhythmnet_loss(resnet_outputs, gru_outputs, target, weight=100.0):
    """JAX/Pallas equivalent of RhythmNetLoss(weight).forward(...)."""
    r = _as_2d_f32(resnet_outputs)
    t = _as_2d_f32(target)
    g = _as_2d_f32(gru_outputs)
    assert r.shape == t.shape, "L1 operands must match in shape"

    n_r = int(r.size)
    n_g = int(g.size)

    kernel = functools.partial(
        _rhythmnet_loss_kernel,
        inv_nr=1.0 / float(n_r),
        inv_ng=1.0 / float(n_g),
        lambd=float(weight),
    )

    cost = pl.CostEstimate(
        flops=3 * n_r + 5 * n_g,
        transcendentals=0,
        bytes_accessed=4 * (2 * n_r + n_g) + 4,
    )

    vmem_full = pl.BlockSpec(memory_space=pltpu.MemorySpace.VMEM)
    loss = pl.pallas_call(
        kernel,
        out_shape=jax.ShapeDtypeStruct((1, 1), jnp.float32),
        in_specs=[vmem_full, vmem_full, vmem_full],
        out_specs=pl.BlockSpec(memory_space=pltpu.MemorySpace.SMEM),
        cost_estimate=cost,
    )(r, t, g)
    # Match torch.zeros(1)-based accumulation: result has shape (1,).
    return loss.reshape(1)


def _reference(resnet_outputs, gru_outputs, target, weight=100.0):
    l1 = jnp.mean(jnp.abs(resnet_outputs - target))
    g = gru_outputs.reshape(-1)
    smooth = jnp.mean(jnp.abs(g - jnp.mean(g)))
    return (l1 + weight * smooth).reshape(1)


if __name__ == "__main__":
    key = jax.random.PRNGKey(0)
    k1, k2, k3 = jax.random.split(key, 3)

    # Small shapes consistent with the module: per-clip HR estimates (batch, seq).
    resnet_outputs = 70.0 + 5.0 * jax.random.normal(k1, (2, 8), jnp.float32)
    target = 70.0 + 5.0 * jax.random.normal(k2, (2, 8), jnp.float32)
    gru_outputs = 70.0 + 5.0 * jax.random.normal(k3, (2, 8), jnp.float32)

    out = rhythmnet_loss(resnet_outputs, gru_outputs, target, weight=100.0)
    out = jax.block_until_ready(out)

    ref = _reference(resnet_outputs, gru_outputs, target, weight=100.0)
    assert out.shape == (1,)
    assert jnp.allclose(out, ref, rtol=1e-5, atol=1e-5), (out, ref)

    print("KERNEL_OK")
</pallas_src>

<mosaic_0001>
module attributes {stable_mosaic.version = 11 : i64} {
  func.func @_rhythmnet_loss_kernel(%arg0: memref<2x8xf32, #tpu.memory_space<vmem>>, %arg1: memref<2x8xf32, #tpu.memory_space<vmem>>, %arg2: memref<2x8xf32, #tpu.memory_space<vmem>>, %arg3: memref<1x1xf32, #tpu.memory_space<smem>>) attributes {dimension_semantics = [], scalar_prefetch = 0 : i64, scratch_operands = 0 : i64, tpu.core_type = #tpu.core_type<tc>} {
    %c0 = arith.constant 0 : index
    %c0_0 = arith.constant 0 : index
    %0 = vector.load %arg0[%c0, %c0_0] : memref<2x8xf32, #tpu.memory_space<vmem>>, vector<2x8xf32>
    %c0_1 = arith.constant 0 : index
    %c0_2 = arith.constant 0 : index
    %1 = vector.load %arg1[%c0_1, %c0_2] : memref<2x8xf32, #tpu.memory_space<vmem>>, vector<2x8xf32>
    %2 = arith.subf %0, %1 : vector<2x8xf32>
    %3 = math.absf %2 : vector<2x8xf32>
    %cst = arith.constant dense<0.000000e+00> : vector<8xf32>
    %4 = vector.multi_reduction <add>, %3, %cst [0] : vector<2x8xf32> to vector<8xf32>
    %5 = vector.shape_cast %4 : vector<8xf32> to vector<1x8xf32>
    %6 = vector.shape_cast %5 : vector<1x8xf32> to vector<1x1x8xf32>
    %cst_3 = arith.constant dense<0.000000e+00> : vector<1xf32>
    %7 = vector.multi_reduction <add>, %6, %cst_3 [1, 2] : vector<1x1x8xf32> to vector<1xf32>
    %8 = vector.shape_cast %7 : vector<1xf32> to vector<1x1x1xf32>
    %9 = vector.extract %8[0, 0, 0] : f32 from vector<1x1x1xf32>
    %cst_4 = arith.constant 6.250000e-02 : f32
    %10 = arith.mulf %9, %cst_4 : f32
    %c0_5 = arith.constant 0 : index
    %c0_6 = arith.constant 0 : index
    %11 = vector.load %arg2[%c0_5, %c0_6] : memref<2x8xf32, #tpu.memory_space<vmem>>, vector<2x8xf32>
    %cst_7 = arith.constant dense<0.000000e+00> : vector<8xf32>
    %12 = vector.multi_reduction <add>, %11, %cst_7 [0] : vector<2x8xf32> to vector<8xf32>
    %13 = vector.shape_cast %12 : vector<8xf32> to vector<1x8xf32>
    %14 = vector.shape_cast %13 : vector<1x8xf32> to vector<1x1x8xf32>
    %cst_8 = arith.constant dense<0.000000e+00> : vector<1xf32>
    %15 = vector.multi_reduction <add>, %14, %cst_8 [1, 2] : vector<1x1x8xf32> to vector<1xf32>
    %16 = vector.shape_cast %15 : vector<1xf32> to vector<1x1x1xf32>
    %17 = vector.extract %16[0, 0, 0] : f32 from vector<1x1x1xf32>
    %cst_9 = arith.constant 6.250000e-02 : f32
    %18 = arith.mulf %17, %cst_9 : f32
    %19 = vector.broadcast %18 : f32 to vector<2x8xf32>
    %20 = arith.subf %11, %19 : vector<2x8xf32>
    %21 = math.absf %20 : vector<2x8xf32>
    %cst_10 = arith.constant dense<0.000000e+00> : vector<8xf32>
    %22 = vector.multi_reduction <add>, %21, %cst_10 [0] : vector<2x8xf32> to vector<8xf32>
    %23 = vector.shape_cast %22 : vector<8xf32> to vector<1x8xf32>
    %24 = vector.shape_cast %23 : vector<1x8xf32> to vector<1x1x8xf32>
    %cst_11 = arith.constant dense<0.000000e+00> : vector<1xf32>
    %25 = vector.multi_reduction <add>, %24, %cst_11 [1, 2] : vector<1x1x8xf32> to vector<1xf32>
    %26 = vector.shape_cast %25 : vector<1xf32> to vector<1x1x1xf32>
    %27 = vector.extract %26[0, 0, 0] : f32 from vector<1x1x1xf32>
    %cst_12 = arith.constant 6.250000e-02 : f32
    %28 = arith.mulf %27, %cst_12 : f32
    %cst_13 = arith.constant 1.000000e+02 : f32
    %29 = arith.mulf %cst_13, %28 : f32
    %30 = arith.addf %10, %29 : f32
    %c0_14 = arith.constant 0 : index
    %c0_15 = arith.constant 0 : index
    %31 = memref.load %arg3[%c0_14, %c0_15] : memref<1x1xf32, #tpu.memory_space<smem>>
    memref.store %30, %arg3[%c0_14, %c0_15] : memref<1x1xf32, #tpu.memory_space<smem>>
    return
  }
}

</mosaic_0001>

<bundles_post_ra>
// kernel: tpu_custom_call.1
= control target key start
LH: loop header
LB: loop body
LE: loop exit
PB: predicated region body
PF: predicated region fallthrough
CT: control target
= control target key end

     0   :  { %8 = vsyncpa [#allocation3], 0  ;;  %s211_s0 = inlined_call_operand.hbm [shape: f32[2,8], index: 0, kind: input, shape index: {}]   ;;  %s212_s1 = inlined_call_operand.vmem [shape: f32[2,8], index: 1, kind: input, shape index: {}]   ;;  %s213_s2 = inlined_call_operand.vmem [shape: f32[2,8], index: 2, kind: input, shape index: {}]   ;;  %s214_s3 = inlined_call_operand.hbm [shape: f32[1,1], index: 3, kind: output, shape index: {}]  }
   0x1   :  { %9 = vsyncpa [#allocation4], 0  ;;  %s153_s12 = smov [#allocation2]   ;;  %s117_s16 = scalar_lea.hbm %s211_s0, 32 }
   0x2   :  { %s16_s13 = sshll.u32 %s153_s12, 4  ;;  %p118_p0 = scmp.ne.s32.totalorder %s211_s0, %s117_s16  ;;  %s17_s13 = int_to_ptr.vmem [resolvable:$true] %s16_s13 }
   0x3   :  { %p121_p1 = scmp.lt.u32.totalorder %s117_s16, %s211_s0 }
   0x5   :  { %p123_p2 = pnand %p121_p1, %p118_p0 }
   0x7   :  { %126 = shalt.err (!%p123_p2)
}
   0x8   :  { %s127_s21 = scalar_lea.vmem %s17_s13, 32  ;;  %p132_p4 = scmp.lt.s32.totalorder %s17_s13, %s17_s13 }
   0x9   :  { %p128_p3 = scmp.ne.s32.totalorder %s17_s13, %s127_s21  ;;  %p133_p5 = scmp.lt.s32.totalorder %s127_s21, %s127_s21 }
   0xb   :  { %p134_p6 = por %p133_p5, %p132_p4 }
   0xd   :  { %p135_p7 = pnand %p134_p6, %p128_p3 }
   0xf   :  { %138 = shalt.err (!%p135_p7)
}
  0x10   :  { %19 = dma.hbm_to_vmem [thread:$0]  %s211_s0, 32, %s17_s13, [#allocation3]  }
  0x11   :  { %149 = dma.done.wait [#allocation3], 32  }
  0x12   :  { %150 = vsyncadd [#allocation3], 4294967264  ;;  %vm31_vm0 = vcmask 58368   ;;  %v27_v0 = vld [vmem:[#allocation2] sm:$0x3]  ;;  %vm39_vm1 = vcmask 57344  }
  0x13   :  { %v28_v1 = vld [vmem:[%s212_s1] sm:$0x3]  ;;  %s139_s8 = scalar_lea.hbm %s214_s3, 16 }
  0x14   :  { %v51_v2 = vld [vmem:[%s213_s2] sm:$0x3]  ;;  %v29_v3 = vsub.f32 %v27_v0, %v28_v1  ;;  %p140_p8 = scmp.ne.s32.totalorder %s214_s3, %s139_s8  ;;  %p143_p9 = scmp.lt.u32.totalorder %s139_s8, %s214_s3 }
  0x15   :  { %v52_v4 = vsel %vm31_vm0, %v51_v2, 0.0 }
  0x16   :  { %v53_v5 = vrot.slane %v52_v4, 4  ;;  %v30_v6 = vand.u32 2147483647, %v29_v3  ;;  %p145_p10 = pnand %p143_p9, %p140_p8 }
  0x18   :  { %v54_v7 = vadd.f32 %v53_v5, %v52_v4  ;;  %v32_v8 = vsel %vm31_vm0, %v30_v6, 0.0 }
  0x19   :  { %v33_v9 = vrot.slane %v32_v8, 4 }
  0x1a   :  { %v55_v10 = vrot.slane %v54_v7, 2 }
  0x1b   :  { %v34_v11 = vadd.f32 %v33_v9, %v32_v8 }
  0x1c   :  { %v56_v12 = vadd.f32 %v55_v10, %v54_v7 }
  0x1d   :  { %v35_v13 = vrot.slane %v34_v11, 2 }
  0x1e   :  { %v57_v15 = vrot.slane %v56_v12, 1 }
  0x1f   :  { %v36_v14 = vadd.f32 %v35_v13, %v34_v11 }
  0x20   :  { %v58_v18 = vadd.f32 %v57_v15, %v56_v12 }
  0x21   :  { %v37_v16 = vrot.slane %v36_v14, 1 }
  0x22   :  { %v59_v20 = vsel %vm39_vm1, %v58_v18, 0.0 }
  0x23   :  { %v38_v17 = vadd.f32 %v37_v16, %v36_v14 }
  0x25   :  { %v40_v19 = vsel %vm39_vm1, %v38_v17, 0.0 }
  0x26   :  { %41 = vadd.xlane.f32.xlu0 %v40_v19 }
  0x2a   :  { %60 = vadd.xlane.f32.xlu0 %v59_v20 }
  0xb3   :  { %v42_v21 = vpop.xlane.xlu0 %41 }
  0xb4   :  { %v43_v22 = vrot.slane %v42_v21, 4 }
  0xb6   :  { %v44_v23 = vadd.f32 %v43_v22, %v42_v21 }
  0xb7   :  { %v61_v24 = vpop.xlane.xlu0 %60 }
  0xb8   :  { %v45_v25 = vrot.slane %v44_v23, 2  ;;  %v62_v26 = vrot.slane %v61_v24, 4 }
  0xba   :  { %v63_v27 = vadd.f32 %v62_v26, %v61_v24  ;;  %v46_v28 = vadd.f32 %v45_v25, %v44_v23 }
  0xbc   :  { %v64_v29 = vrot.slane %v63_v27, 2  ;;  %v47_v30 = vrot.slane %v46_v28, 1 }
  0xbe   :  { %v65_v31 = vadd.f32 %v64_v29, %v63_v27  ;;  %v48_v32 = vadd.f32 %v47_v30, %v46_v28 }
  0xc0   :  { %109 = vpush %v48_v32  ;;  %v66_v33 = vrot.slane %v65_v31, 1 }
  0xc2   :  { %v67_v34 = vadd.f32 %v66_v33, %v65_v31 }
  0xc4   :  { %111 = vpush %v67_v34 }
  0xf1   :  { %s110_s0 = spop %109 }
  0xf2   :  { %s50_s30 = smul.f32 0.0625, %s110_s0 }
  0xf5   :  { %s112_s1 = spop %111 }
  0xf6   :  { %s69_s2 = smul.f32 0.0625, %s112_s1 }
  0xf8   :  { %v70_v35 = vstv %s69_s2 }
  0xf9   :  { %v71_v36 = vsub.f32 %v51_v2, %v70_v35 }
  0xfb   :  { %v72_v37 = vand.u32 2147483647, %v71_v36 }
  0xfd   :  { %v73_v38 = vsel %vm31_vm0, %v72_v37, 0.0 }
  0xfe   :  { %v74_v39 = vrot.slane %v73_v38, 4 }
 0x100   :  { %v75_v40 = vadd.f32 %v74_v39, %v73_v38 }
 0x102   :  { %v76_v41 = vrot.slane %v75_v40, 2 }
 0x104   :  { %v77_v42 = vadd.f32 %v76_v41, %v75_v40 }
 0x106   :  { %v78_v43 = vrot.slane %v77_v42, 1 }
 0x108   :  { %v79_v44 = vadd.f32 %v78_v43, %v77_v42 }
 0x10a   :  { %v80_v45 = vsel %vm39_vm1, %v79_v44, 0.0 }
 0x10b   :  { %81 = vadd.xlane.f32.xlu1 %v80_v45 }
 0x198   :  { %v82_v46 = vpop.xlane.xlu1 %81 }
 0x199   :  { %v83_v47 = vrot.slane %v82_v46, 4 }
 0x19b   :  { %v84_v48 = vadd.f32 %v83_v47, %v82_v46 }
 0x19d   :  { %v85_v49 = vrot.slane %v84_v48, 2 }
 0x19f   :  { %v86_v50 = vadd.f32 %v85_v49, %v84_v48 }
 0x1a1   :  { %v87_v51 = vrot.slane %v86_v50, 1 }
 0x1a3   :  { %v88_v52 = vadd.f32 %v87_v51, %v86_v50 }
 0x1a5   :  { %113 = vpush %v88_v52 }
 0x1d6   :  { %s114_s28 = spop %113 }
 0x1d7   :  { %s90_s29 = smul.f32 0.0625, %s114_s28 }
 0x1d9   :  { %s91_s4 = smul.f32 100.0, %s90_s29 }
 0x1db   :  { %s92_s5 = sadd.f32 %s91_s4, %s50_s30 }
 0x1dd   :  { %94 = sst [smem:[#allocation5]] %s92_s5 }
 0x1de   :  { %148 = shalt.err (!%p145_p10)
}
 0x1df   :  { %s154_s13 = smov [#allocation5]  }
 0x1e0   :  { %102 = dma.smem_to_hbm %s154_s13, 16, %s214_s3, [#allocation4]  }
 0x1e1   :  { %151 = dma.done.wait [#allocation4], 16  }
 0x1e2   :  { %152 = vsyncadd [#allocation4], 4294967280 }
 0x1e3   :  { %106 = sfence }
 0x1e4   :  { %107 = vsyncpa [#allocation3], 1 }
 0x1e5   :  { %108 = vsyncpa [#allocation4], 1 }

</bundles_post_ra>
